<compile_context>
chip_gen: v7x
topology: tpu7x:2x2x1
jax: 0.10.0
libtpu: 0.0.40
codegen_flags: <defaults>
</compile_context>

<pallas_src>
import jax
import jax.numpy as jnp
from jax.experimental import pallas as pl
from jax.experimental.pallas import tpu as pltpu

EMBEDDING_DIM = 16
HIDDEN_UNITS = 128
NUM_USERS = 50
NUM_ADS = 40
NUM_PIDS = 6
IN_FEATURES = EMBEDDING_DIM * 3 + 4  # 52


def _round_up(x, m):
    return ((x + m - 1) // m) * m


def ctr_mlp_kernel(ids_ref, t_ref, cw_ref, tw_ref, b1_ref, w2_ref, b2_ref,
                   w3_ref, b3_ref, o_ref):
    bt = ids_ref.shape[0]
    vocab = cw_ref.shape[0]  # 99 = (NUM_USERS+1)+(NUM_ADS+1)+(NUM_PIDS+1)

    # ids are pre-offset into the fused embedding table -> build a multi-hot
    # matrix so the three embedding lookups become one MXU matmul.
    ids = ids_ref[...]                                        # (Bt, 3) int32
    iota = jax.lax.broadcasted_iota(jnp.int32, (bt, vocab), 1)
    multi_hot = ((iota == ids[:, 0:1]) |
                 (iota == ids[:, 1:2]) |
                 (iota == ids[:, 2:3]))
    mh = jnp.where(multi_hot, 1.0, 0.0).astype(jnp.bfloat16)  # (Bt, vocab)

    # Layer 1: fused embedding matmul + time-feature matmul (bf16 -> f32 acc).
    h1 = jnp.dot(mh, cw_ref[...], preferred_element_type=jnp.float32)
    h1 = h1 + jnp.dot(t_ref[...].astype(jnp.bfloat16), tw_ref[...],
                      preferred_element_type=jnp.float32)
    h1 = jnp.maximum(h1 + b1_ref[...], 0.0)                   # ReLU (f32)

    # Layer 2.
    h2 = jnp.dot(h1.astype(jnp.bfloat16), w2_ref[...],
                 preferred_element_type=jnp.float32)
    h2 = jnp.maximum(h2 + b2_ref[...], 0.0)                   # ReLU (f32)

    # Layer 3 (128 -> 1): VPU multiply + XLU lane reduce, b3 scalar from SMEM.
    logit = jnp.sum(h2 * w3_ref[...], axis=-1, keepdims=True) + b3_ref[0, 0]
    o_ref[...] = jax.nn.sigmoid(logit)


def ctr_mlp_forward(params, user_id, ad_id, pid_id, hour, dayofweek,
                    hour_block, is_weekend, *, block_b=512):
    e = EMBEDDING_DIM
    B = user_id.shape[0]

    # ---- batch-independent weight preprocessing: fold embeddings into W1 ----
    w1 = params["w1"].astype(jnp.float32)                       # (52, 128)
    uw = params["user_emb"].astype(jnp.float32) @ w1[:e]        # (51, 128)
    aw = params["ad_emb"].astype(jnp.float32) @ w1[e:2 * e]     # (41, 128)
    pw = params["pid_emb"].astype(jnp.float32) @ w1[2 * e:3 * e]  # (7, 128)
    cw = jnp.concatenate([uw, aw, pw], axis=0).astype(jnp.bfloat16)  # (99, 128)
    tw = w1[3 * e:].astype(jnp.bfloat16)                        # (4, 128)
    w2 = params["w2"].astype(jnp.bfloat16)                      # (128, 128)
    b1 = params["b1"].astype(jnp.float32).reshape(1, HIDDEN_UNITS)
    b2 = params["b2"].astype(jnp.float32).reshape(1, HIDDEN_UNITS)
    w3 = params["w3"].astype(jnp.float32).reshape(1, HIDDEN_UNITS)
    b3 = params["b3"].astype(jnp.float32).reshape(1, 1)

    n_user = params["user_emb"].shape[0]
    n_ad = params["ad_emb"].shape[0]

    # ---- per-batch glue: offset ids into the fused table, stack time feats ----
    ids = jnp.stack([user_id.astype(jnp.int32),
                     ad_id.astype(jnp.int32) + n_user,
                     pid_id.astype(jnp.int32) + n_user + n_ad],
                    axis=1)                                     # (B, 3)
    tfeat = jnp.stack([hour, dayofweek, hour_block, is_weekend],
                      axis=1).astype(jnp.float32)               # (B, 4)

    # ---- batch tiling: single tile for tiny B, 512-row tiles otherwise ----
    bt = block_b if B >= block_b else _round_up(max(B, 1), 8)
    bp = _round_up(B, bt)
    if bp != B:  # pad tail tile; padded rows hit row 0 of the table (valid)
        ids = jnp.pad(ids, ((0, bp - B), (0, 0)))
        tfeat = jnp.pad(tfeat, ((0, bp - B), (0, 0)))

    tiled = lambda cols: pl.BlockSpec((bt, cols), lambda i: (i, 0))
    resident = lambda arr: pl.BlockSpec(arr.shape, lambda i: (0, 0))

    out = pl.pallas_call(
        ctr_mlp_kernel,
        out_shape=jax.ShapeDtypeStruct((bp, 1), jnp.float32),
        grid_spec=pltpu.PrefetchScalarGridSpec(
            num_scalar_prefetch=0,
            grid=(bp // bt,),
            in_specs=[
                tiled(3),                 # ids (per-tile)
                tiled(4),                 # time features (per-tile)
                resident(cw), resident(tw), resident(b1),
                resident(w2), resident(b2),
                resident(w3),
                pl.BlockSpec(memory_space=pltpu.MemorySpace.SMEM),  # b3 scalar
            ],
            out_specs=pl.BlockSpec((bt, 1), lambda i: (i, 0)),
        ),
        compiler_params=pltpu.CompilerParams(
            dimension_semantics=("parallel",)),
    )(ids, tfeat, cw, tw, b1, w2, b2, w3, b3)
    return out[:B, 0]  # squeeze(1), drop padding


def ctr_mlp_reference(params, user_id, ad_id, pid_id, hour, dayofweek,
                      hour_block, is_weekend):
    uv = jnp.take(params["user_emb"], user_id, axis=0)
    av = jnp.take(params["ad_emb"], ad_id, axis=0)
    pv = jnp.take(params["pid_emb"], pid_id, axis=0)
    x = jnp.concatenate([uv, av, pv, hour[:, None], dayofweek[:, None],
                         hour_block[:, None], is_weekend[:, None]], axis=1)
    h1 = jnp.maximum(x @ params["w1"] + params["b1"], 0.0)
    h2 = jnp.maximum(h1 @ params["w2"] + params["b2"], 0.0)
    return jax.nn.sigmoid(h2 @ params["w3"] + params["b3"])[:, 0]


def init_params(key):
    ks = jax.random.split(key, 9)
    scale = 0.05
    return {
        "user_emb": scale * jax.random.normal(ks[0], (NUM_USERS + 1, EMBEDDING_DIM), jnp.float32),
        "ad_emb":   scale * jax.random.normal(ks[1], (NUM_ADS + 1, EMBEDDING_DIM), jnp.float32),
        "pid_emb":  scale * jax.random.normal(ks[2], (NUM_PIDS + 1, EMBEDDING_DIM), jnp.float32),
        "w1": scale * jax.random.normal(ks[3], (IN_FEATURES, HIDDEN_UNITS), jnp.float32),
        "b1": scale * jax.random.normal(ks[4], (1, HIDDEN_UNITS), jnp.float32),
        "w2": scale * jax.random.normal(ks[5], (HIDDEN_UNITS, HIDDEN_UNITS), jnp.float32),
        "b2": scale * jax.random.normal(ks[6], (1, HIDDEN_UNITS), jnp.float32),
        "w3": scale * jax.random.normal(ks[7], (HIDDEN_UNITS, 1), jnp.float32),
        "b3": scale * jax.random.normal(ks[8], (1, 1), jnp.float32),
    }


def _make_inputs(key, batch):
    dks = jax.random.split(key, 7)
    user_id = jax.random.randint(dks[0], (batch,), 0, NUM_USERS + 1)
    ad_id = jax.random.randint(dks[1], (batch,), 0, NUM_ADS + 1)
    pid_id = jax.random.randint(dks[2], (batch,), 0, NUM_PIDS + 1)
    hour = jax.random.randint(dks[3], (batch,), 0, 24).astype(jnp.float32)
    dayofweek = jax.random.randint(dks[4], (batch,), 0, 7).astype(jnp.float32)
    hour_block = jax.random.randint(dks[5], (batch,), 0, 4).astype(jnp.float32)
    is_weekend = jax.random.randint(dks[6], (batch,), 0, 2).astype(jnp.float32)
    return user_id, ad_id, pid_id, hour, dayofweek, hour_block, is_weekend


if __name__ == "__main__":
    key = jax.random.PRNGKey(0)
    pkey, dkey1, dkey2 = jax.random.split(key, 3)
    params = init_params(pkey)

    # Small single-tile case (B=8).
    B = 8
    inputs = _make_inputs(dkey1, B)
    out = ctr_mlp_forward(params, *inputs)
    jax.block_until_ready(out)
    ref = ctr_mlp_reference(params, *inputs)
    assert out.shape == (B,)
    assert jnp.allclose(out, ref, atol=2e-2, rtol=2e-2), (
        f"max err {jnp.max(jnp.abs(out - ref))}")

    # Multi-tile case with a ragged tail (exercises grid + padding path).
    B2 = 600
    inputs2 = _make_inputs(dkey2, B2)
    out2 = ctr_mlp_forward(params, *inputs2, block_b=256)  # grid=(3,), padded tail
    jax.block_until_ready(out2)
    ref2 = ctr_mlp_reference(params, *inputs2)
    assert out2.shape == (B2,)
    assert jnp.allclose(out2, ref2, atol=2e-2, rtol=2e-2), (
        f"max err {jnp.max(jnp.abs(out2 - ref2))}")

    print("KERNEL_OK")
</pallas_src>

<mosaic_0001>
module attributes {stable_mosaic.version = 11 : i64} {
  func.func @ctr_mlp_kernel(%arg0: i32, %arg1: memref<8x3xi32, #tpu.memory_space<vmem>>, %arg2: memref<8x4xf32, #tpu.memory_space<vmem>>, %arg3: memref<99x128xbf16, #tpu.memory_space<vmem>>, %arg4: memref<4x128xbf16, #tpu.memory_space<vmem>>, %arg5: memref<1x128xf32, #tpu.memory_space<vmem>>, %arg6: memref<128x128xbf16, #tpu.memory_space<vmem>>, %arg7: memref<1x128xf32, #tpu.memory_space<vmem>>, %arg8: memref<1x128xf32, #tpu.memory_space<vmem>>, %arg9: memref<1x1xf32, #tpu.memory_space<smem>>, %arg10: memref<8x1xf32, #tpu.memory_space<vmem>>) attributes {dimension_semantics = [#tpu.dimension_semantics<parallel>], iteration_bounds = array<i64: 1>, scalar_prefetch = 0 : i64, scratch_operands = 0 : i64, tpu.core_type = #tpu.core_type<tc>, window_params = [{transform_indices = @transform_0, window_bounds = array<i64: 8, 3>}, {transform_indices = @transform_1, window_bounds = array<i64: 8, 4>}, {pipeline_mode = #tpu.pipeline_mode<synchronous>, transform_indices = @transform_2, window_bounds = array<i64: 99, 128>}, {pipeline_mode = #tpu.pipeline_mode<synchronous>, transform_indices = @transform_3, window_bounds = array<i64: 4, 128>}, {pipeline_mode = #tpu.pipeline_mode<synchronous>, transform_indices = @transform_4, window_bounds = array<i64: 1, 128>}, {pipeline_mode = #tpu.pipeline_mode<synchronous>, transform_indices = @transform_5, window_bounds = array<i64: 128, 128>}, {pipeline_mode = #tpu.pipeline_mode<synchronous>, transform_indices = @transform_6, window_bounds = array<i64: 1, 128>}, {pipeline_mode = #tpu.pipeline_mode<synchronous>, transform_indices = @transform_7, window_bounds = array<i64: 1, 128>}, {transform_indices = @transform_8, window_bounds = array<i64: 1, 1>}, {transform_indices = @transform_9, window_bounds = array<i64: 8, 1>}]} {
    %c0 = arith.constant 0 : index
    %c0_0 = arith.constant 0 : index
    %0 = vector.load %arg1[%c0, %c0_0] : memref<8x3xi32, #tpu.memory_space<vmem>>, vector<8x3xi32>
    %1 = tpu.iota {dimensions = array<i32: 1>} : vector<8x99xi32>
    %2 = vector.extract_strided_slice %0 {offsets = [0, 0], sizes = [8, 1], strides = [1, 1]} : vector<8x3xi32> to vector<8x1xi32>
    %3 = vector.broadcast %2 : vector<8x1xi32> to vector<8x99xi32>
    %4 = arith.cmpi eq, %1, %3 : vector<8x99xi32>
    %5 = vector.extract_strided_slice %0 {offsets = [0, 1], sizes = [8, 1], strides = [1, 1]} : vector<8x3xi32> to vector<8x1xi32>
    %6 = vector.broadcast %5 : vector<8x1xi32> to vector<8x99xi32>
    %7 = arith.cmpi eq, %1, %6 : vector<8x99xi32>
    %8 = arith.ori %4, %7 : vector<8x99xi1>
    %9 = vector.extract_strided_slice %0 {offsets = [0, 2], sizes = [8, 1], strides = [1, 1]} : vector<8x3xi32> to vector<8x1xi32>
    %10 = vector.broadcast %9 : vector<8x1xi32> to vector<8x99xi32>
    %11 = arith.cmpi eq, %1, %10 : vector<8x99xi32>
    %12 = arith.ori %8, %11 : vector<8x99xi1>
    %cst = arith.constant 1.000000e+00 : f32
    %cst_1 = arith.constant 0.000000e+00 : f32
    %13 = vector.broadcast %cst : f32 to vector<8x99xf32>
    %14 = vector.broadcast %cst_1 : f32 to vector<8x99xf32>
    %15 = arith.select %12, %13, %14 : vector<8x99xi1>, vector<8x99xf32>
    %16 = arith.truncf %15 : vector<8x99xf32> to vector<8x99xbf16>
    %c0_2 = arith.constant 0 : index
    %c0_3 = arith.constant 0 : index
    %17 = vector.load %arg3[%c0_2, %c0_3] : memref<99x128xbf16, #tpu.memory_space<vmem>>, vector<99x128xbf16>
    %cst_4 = arith.constant dense<0.000000e+00> : vector<8x128xf32>
    %18 = tpu.matmul %16, %17, %cst_4 {dimension_numbers = #tpu.dot_dimension_numbers<[1], [0], [0], [1], [0, 0, 1, 1], [], []>} : vector<8x99xbf16>, vector<99x128xbf16>, vector<8x128xf32> -> vector<8x128xf32>
    %c0_5 = arith.constant 0 : index
    %c0_6 = arith.constant 0 : index
    %19 = vector.load %arg2[%c0_5, %c0_6] : memref<8x4xf32, #tpu.memory_space<vmem>>, vector<8x4xf32>
    %20 = arith.truncf %19 : vector<8x4xf32> to vector<8x4xbf16>
    %c0_7 = arith.constant 0 : index
    %c0_8 = arith.constant 0 : index
    %21 = vector.load %arg4[%c0_7, %c0_8] : memref<4x128xbf16, #tpu.memory_space<vmem>>, vector<4x128xbf16>
    %cst_9 = arith.constant dense<0.000000e+00> : vector<8x128xf32>
    %22 = tpu.matmul %20, %21, %cst_9 {dimension_numbers = #tpu.dot_dimension_numbers<[1], [0], [0], [1], [0, 0, 1, 1], [], []>} : vector<8x4xbf16>, vector<4x128xbf16>, vector<8x128xf32> -> vector<8x128xf32>
    %23 = arith.addf %18, %22 : vector<8x128xf32>
    %c0_10 = arith.constant 0 : index
    %c0_11 = arith.constant 0 : index
    %24 = vector.load %arg5[%c0_10, %c0_11] : memref<1x128xf32, #tpu.memory_space<vmem>>, vector<1x128xf32>
    %25 = vector.broadcast %24 : vector<1x128xf32> to vector<8x128xf32>
    %26 = arith.addf %23, %25 : vector<8x128xf32>
    %cst_12 = arith.constant 0.000000e+00 : f32
    %27 = vector.broadcast %cst_12 : f32 to vector<8x128xf32>
    %28 = arith.maximumf %26, %27 : vector<8x128xf32>
    %29 = arith.truncf %28 : vector<8x128xf32> to vector<8x128xbf16>
    %c0_13 = arith.constant 0 : index
    %c0_14 = arith.constant 0 : index
    %30 = vector.load %arg6[%c0_13, %c0_14] : memref<128x128xbf16, #tpu.memory_space<vmem>>, vector<128x128xbf16>
    %cst_15 = arith.constant dense<0.000000e+00> : vector<8x128xf32>
    %31 = tpu.matmul %29, %30, %cst_15 {dimension_numbers = #tpu.dot_dimension_numbers<[1], [0], [0], [1], [0, 0, 1, 1], [], []>} : vector<8x128xbf16>, vector<128x128xbf16>, vector<8x128xf32> -> vector<8x128xf32>
    %c0_16 = arith.constant 0 : index
    %c0_17 = arith.constant 0 : index
    %32 = vector.load %arg7[%c0_16, %c0_17] : memref<1x128xf32, #tpu.memory_space<vmem>>, vector<1x128xf32>
    %33 = vector.broadcast %32 : vector<1x128xf32> to vector<8x128xf32>
    %34 = arith.addf %31, %33 : vector<8x128xf32>
    %cst_18 = arith.constant 0.000000e+00 : f32
    %35 = vector.broadcast %cst_18 : f32 to vector<8x128xf32>
    %36 = arith.maximumf %34, %35 : vector<8x128xf32>
    %c0_19 = arith.constant 0 : index
    %c0_20 = arith.constant 0 : index
    %37 = vector.load %arg8[%c0_19, %c0_20] : memref<1x128xf32, #tpu.memory_space<vmem>>, vector<1x128xf32>
    %38 = vector.broadcast %37 : vector<1x128xf32> to vector<8x128xf32>
    %39 = arith.mulf %36, %38 : vector<8x128xf32>
    %cst_21 = arith.constant dense<0.000000e+00> : vector<8xf32>
    %40 = vector.multi_reduction <add>, %39, %cst_21 [1] : vector<8x128xf32> to vector<8xf32>
    %41 = vector.shape_cast %40 : vector<8xf32> to vector<8x1xf32>
    %c0_22 = arith.constant 0 : index
    %c0_23 = arith.constant 0 : index
    %42 = memref.load %arg9[%c0_22, %c0_23] : memref<1x1xf32, #tpu.memory_space<smem>>
    %43 = vector.broadcast %42 : f32 to vector<8x1xf32>
    %44 = arith.addf %41, %43 : vector<8x1xf32>
    %45 = arith.negf %44 : vector<8x1xf32>
    %46 = math.exp %45 : vector<8x1xf32>
    %cst_24 = arith.constant 1.000000e+00 : f32
    %47 = vector.broadcast %cst_24 : f32 to vector<8x1xf32>
    %48 = arith.addf %47, %46 : vector<8x1xf32>
    %49 = arith.divf %47, %48 : vector<8x1xf32>
    %c0_25 = arith.constant 0 : index
    %c0_26 = arith.constant 0 : index
    %50 = vector.load %arg10[%c0_25, %c0_26] : memref<8x1xf32, #tpu.memory_space<vmem>>, vector<8x1xf32>
    tpu.vector_store %arg10[%c0_25, %c0_26], %49 {strides = array<i32>} : memref<8x1xf32, #tpu.memory_space<vmem>>, vector<8x1xf32>,
    return
  }
  func.func @transform_0(%arg0: i32) -> (i32, i32) {
    %c0_i32 = arith.constant 0 : i32
    %c0_i32_0 = arith.constant 0 : i32
    return %arg0, %c0_i32 : i32, i32
  }
  func.func @transform_1(%arg0: i32) -> (i32, i32) {
    %c0_i32 = arith.constant 0 : i32
    %c0_i32_0 = arith.constant 0 : i32
    return %arg0, %c0_i32 : i32, i32
  }
  func.func @transform_2(%arg0: i32) -> (i32, i32) {
    %c0_i32 = arith.constant 0 : i32
    %c0_i32_0 = arith.constant 0 : i32
    %c0_i32_1 = arith.constant 0 : i32
    return %c0_i32, %c0_i32_0 : i32, i32
  }
  func.func @transform_3(%arg0: i32) -> (i32, i32) {
    %c0_i32 = arith.constant 0 : i32
    %c0_i32_0 = arith.constant 0 : i32
    %c0_i32_1 = arith.constant 0 : i32
    return %c0_i32, %c0_i32_0 : i32, i32
  }
  func.func @transform_4(%arg0: i32) -> (i32, i32) {
    %c0_i32 = arith.constant 0 : i32
    %c0_i32_0 = arith.constant 0 : i32
    %c0_i32_1 = arith.constant 0 : i32
    return %c0_i32, %c0_i32_0 : i32, i32
  }
  func.func @transform_5(%arg0: i32) -> (i32, i32) {
    %c0_i32 = arith.constant 0 : i32
    %c0_i32_0 = arith.constant 0 : i32
    %c0_i32_1 = arith.constant 0 : i32
    return %c0_i32, %c0_i32_0 : i32, i32
  }
  func.func @transform_6(%arg0: i32) -> (i32, i32) {
    %c0_i32 = arith.constant 0 : i32
    %c0_i32_0 = arith.constant 0 : i32
    %c0_i32_1 = arith.constant 0 : i32
    return %c0_i32, %c0_i32_0 : i32, i32
  }
  func.func @transform_7(%arg0: i32) -> (i32, i32) {
    %c0_i32 = arith.constant 0 : i32
    %c0_i32_0 = arith.constant 0 : i32
    %c0_i32_1 = arith.constant 0 : i32
    return %c0_i32, %c0_i32_0 : i32, i32
  }
  func.func @transform_8(%arg0: i32) -> (i32, i32) {
    %c0_i32 = arith.constant 0 : i32
    %c0_i32_0 = arith.constant 0 : i32
    %c0_i32_1 = arith.constant 0 : i32
    return %c0_i32, %c0_i32_0 : i32, i32
  }
  func.func @transform_9(%arg0: i32) -> (i32, i32) {
    %c0_i32 = arith.constant 0 : i32
    %c0_i32_0 = arith.constant 0 : i32
    return %arg0, %c0_i32 : i32, i32
  }
}

</mosaic_0001>

<bundles_post_ra>
// kernel: tpu_custom_call.1
= control target key start
LH: loop header
LB: loop body
LE: loop exit
PB: predicated region body
PF: predicated region fallthrough
CT: control target
= control target key end

     0   :  { %15 = vsyncpa [#allocation4], 0  ;;  %s681_s0 = inlined_call_operand.vmem [shape: s32[8,3], index: 0, kind: input, shape index: {}]   ;;  %s682_s1 = inlined_call_operand.vmem [shape: f32[8,4], index: 1, kind: input, shape index: {}]   ;;  %s683_s2 = inlined_call_operand.hbm [shape: bf16[99,128], index: 2, kind: input, shape index: {}]   ;;  %s684_s3 = inlined_call_operand.vmem [shape: bf16[4,128], index: 3, kind: input, shape index: {}]   ;;  %s685_s4 = inlined_call_operand.vmem [shape: f32[1,128], index: 4, kind: input, shape index: {}]   ;;  %s686_s5 = inlined_call_operand.hbm [shape: bf16[128,128], index: 5, kind: input, shape index: {}]   ;;  %s687_s6 = inlined_call_operand.vmem [shape: f32[1,128], index: 6, kind: input, shape index: {}]   ;;  %s688_s7 = inlined_call_operand.vmem [shape: f32[1,128], index: 7, kind: input, shape index: {}]   ;;  %s689_s8 = inlined_call_operand.<no memory space> [shape: f32[1,1], index: 8, kind: input, shape index: {}]   ;;  %s690_s9 = inlined_call_operand.vmem [shape: f32[8,1], index: 9, kind: output, shape index: {}]  }
   0x1   :  { %16 = vsyncpa [#allocation6], 0  ;;  %s548_s30 = smov [#allocation3]   ;;  %s500_s13 = scalar_lea.hbm %s683_s2, 832 }
   0x2   :  { %s26_s10 = sshll.u32 %s548_s30, 4  ;;  %p501_p0 = scmp.ne.s32.totalorder %s683_s2, %s500_s13  ;;  %s27_s10 = int_to_ptr.vmem [resolvable:$true] %s26_s10 }
   0x3   :  { %p504_p1 = scmp.lt.u32.totalorder %s500_s13, %s683_s2 }
   0x5   :  { %p506_p2 = pnand %p504_p1, %p501_p0 }
   0x7   :  { %509 = shalt.err (!%p506_p2)
}
   0x8   :  { %s510_s18 = scalar_lea.vmem %s27_s10, 832  ;;  %p515_p4 = scmp.lt.s32.totalorder %s27_s10, %s27_s10 }
   0x9   :  { %p511_p3 = scmp.ne.s32.totalorder %s27_s10, %s510_s18  ;;  %p516_p5 = scmp.lt.s32.totalorder %s510_s18, %s510_s18 }
   0xb   :  { %p517_p6 = por %p516_p5, %p515_p4 }
   0xd   :  { %p518_p7 = pnand %p517_p6, %p511_p3 }
   0xf   :  { %521 = shalt.err (!%p518_p7)
}
  0x10   :  { %s549_s19 = smov 64   ;;  %s550_s20 = smov 4  }
  0x11   :  { %32 = dma.hbm_to_vmem [thread:$0]  %s683_s2, 832, %s27_s10, [#allocation4], %s549_s19, %s549_s19, %s550_s20  }
  0x12   :  { %s551_s23 = smov [#allocation5]   ;;  %s522_s27 = scalar_lea.hbm %s686_s5, 1024 }
  0x13   :  { %s42_s24 = sshll.u32 %s551_s23, 4  ;;  %p523_p8 = scmp.ne.s32.totalorder %s686_s5, %s522_s27  ;;  %s43_s24 = int_to_ptr.vmem [resolvable:$true] %s42_s24 }
  0x14   :  { %p526_p9 = scmp.lt.u32.totalorder %s522_s27, %s686_s5 }
  0x16   :  { %p528_p10 = pnand %p526_p9, %p523_p8 }
  0x18   :  { %531 = shalt.err (!%p528_p10)
}
  0x19   :  { %s532_s12 = scalar_lea.vmem %s43_s24, 1024  ;;  %p537_p12 = scmp.lt.s32.totalorder %s43_s24, %s43_s24 }
  0x1a   :  { %p533_p11 = scmp.ne.s32.totalorder %s43_s24, %s532_s12  ;;  %p538_p13 = scmp.lt.s32.totalorder %s532_s12, %s532_s12 }
  0x1c   :  { %p539_p0 = por %p538_p13, %p537_p12 }
  0x1e   :  { %p540_p1 = pnand %p539_p0, %p533_p11 }
  0x20   :  { %543 = shalt.err (!%p540_p1)
}
  0x21   :  { %48 = dma.hbm_to_vmem [thread:$0]  %s686_s5, 1024, %s43_s24, [#allocation6], %s549_s19, %s549_s19, %s550_s20  }
  0x22   :  { %544 = dma.done.wait [#allocation4], 832  }
  0x23   :  { %545 = vsyncadd [#allocation4], 4294966464 }
  0x24   :  { %546 = dma.done.wait [#allocation6], 1024  }
  0x25   :  { %547 = vsyncadd [#allocation6], 4294966272  ;;  %v552_v0 = vmov 0   ;;  %v553_v1 = vmov 2   ;;  %v554_v2 = vmov 0.0   ;;  %vm555_vm0 = vmmov 0  }
  0x26   :  { %477 = vset.pattern.permute.xlu0 %v552_v0  ;;  %479 = vset.pattern.permute.xlu1 %v553_v1  ;;  %vm101_vm1 = vcmask 1041408   ;;  %v62_v3 = vld [vmem:[%s681_s0] sm:$0xff]  ;;  %vm97_vm2 = vcmask 31744   ;;  %v556_v9 = vmov 1   ;;  %v483_v10 = vld [vmem:[#allocation3 + $0x8] sm:$0xff]   ;;  %v484_v11 = vld [vmem:[#allocation3 + $0x10] sm:$0xff]   ;;  %v63_v26 = vlaneseq }
  0x27   :  { %423 = vmatprep.subr.bf16.mxu1 %v554_v2  ;;  %425 = vmatprep.mubr.msk.bf16.mxu1 %vm555_vm0, %v554_v2  ;;  %v96_v4 = vld [vmem:[%s684_s3] sm:$0x3]  ;;  %v485_v12 = vld [vmem:[#allocation3 + $0x18] sm:$0xff]   ;;  %vm188_vm3 = vcmask 1040384   ;;  %v557_v14 = vmov 65535   ;;  %v487_v17 = vld [vmem:[#allocation3 + $0x28] sm:$0xff]   ;;  %v367_v57 = vstv %s689_s8 }
  0x28   :  { %447 = vmatprep.subr.bf16.mxu0 %v554_v2  ;;  %463 = vmatprep.mubr.msk.bf16.mxu0 %vm555_vm0, %v554_v2  ;;  %v103_v5 = vsel %vm101_vm1, %v96_v4, 0  ;;  %v94_v6 = vld [vmem:[%s682_s1] sm:$0xff]  ;;  %v189_v15 = vsel %vm188_vm3, 4294967295, %v557_v14  ;;  %v481_v16 = vld [vmem:[#allocation3 + $0x30] ss:$0 sps:$4 sm:$0x33]  }
  0x29   :  { %66 = vperm.xlu0 %477, %v62_v3   ;;  %75 = vperm.xlu1 %479, %v62_v3   ;;  %v482_v7 = vld [vmem:[#allocation3] sm:$0xff]   ;;  %v95_v8 = vpack.c.bf16 %v94_v6, %v94_v6  ;;  %v190_v18 = vsel %vm101_vm1, %v189_v15, 0  ;;  %v488_v20 = vld [vmem:[#allocation5] sm:$0xff]   ;;  %v491_v23 = vld [vmem:[#allocation5 + $0x18] sm:$0xff]   ;;  %v64_v28 = vand.u32 127, %v63_v26  ;;  %vm184_vm9 = vcmask 809984  }
  0x2a   :  { %424 = vmatpush3.bf16.msra.mxu1 %v103_v5  ;;  %v486_v13 = vld [vmem:[#allocation3 + $0x20] sm:$0xff]   ;;  %v192_v19 = vand.u32 %v481_v16, %v190_v18  ;;  %448 = vmatpush3.bf16.msra.mxu0 %v488_v20  ;;  %v492_v24 = vld [vmem:[#allocation5 + $0x20] sm:$0xff]   ;;  %v495_v38 = vld [vmem:[#allocation5 + $0x38] sm:$0xff]   ;;  %vm375_vm10 = vcmask 7168  }
  0x2b   :  { %429 = vmatprep.subr.bf16.mxu1 %v554_v2  ;;  %v489_v21 = vld [vmem:[#allocation5 + $0x8] sm:$0xff]   ;;  %449 = vmatprep.subr.bf16.mxu0 %v554_v2  ;;  %v490_v22 = vld [vmem:[#allocation5 + $0x10] sm:$0xff]  }
  0x2c   :  { %v493_v25 = vld [vmem:[#allocation5 + $0x28] sm:$0xff]   ;;  %v494_v37 = vld [vmem:[#allocation5 + $0x30] sm:$0xff]  }
  0x2d   :  { %478 = vset.pattern.permute.xlu0 %v556_v9  ;;  %426 = vmatmul.mubr.msk.bf16.vlgmr.msra.gmra.mrb[0].mxu1 %vm97_vm2, %v95_v8  ;;  %v392_v40 = vld [vmem:[%s685_s4] ss:$0 sm:$0xff] }
  0x2e   :  { %70 = vperm.xlu0 %478, %v62_v3   ;;  %430 = vmatpush3.bf16.msra.mxu1 %v482_v7  ;;  %v393_v48 = vld [vmem:[%s687_s6] ss:$0 sm:$0xff] }
  0x2f   :  { %431 = vmatprep.subr.bf16.mxu1 %v554_v2  ;;  %443 = vmatprep.mubr.msk.bf16.mxu1 %vm555_vm0, %v554_v2  ;;  %v402_v53 = vld [vmem:[%s688_s7] ss:$0 sm:$0xff] }
  0x30   :  { %450 = vmatpush3.bf16.msra.mxu0 %v489_v21 }
  0x31   :  { %451 = vmatprep.subr.bf16.mxu0 %v554_v2 }
  0x32   :  { %432 = vmatpush3.bf16.msra.mxu1 %v483_v10  ;;  %480 = vset.pattern.permute.xlu0 %v553_v1 }
  0x33   :  { %433 = vmatprep.subr.bf16.mxu1 %v554_v2 }
  0x34   :  { %452 = vmatpush3.bf16.msra.mxu0 %v490_v22 }
  0x35   :  { %453 = vmatprep.subr.bf16.mxu0 %v554_v2 }
  0x36   :  { %434 = vmatpush3.bf16.msra.mxu1 %v484_v11 }
  0x37   :  { %435 = vmatprep.subr.bf16.mxu1 %v554_v2 }
  0x38   :  { %454 = vmatpush3.bf16.msra.mxu0 %v491_v23 }
  0x39   :  { %455 = vmatprep.subr.bf16.mxu0 %v554_v2 }
  0x3a   :  { %436 = vmatpush3.bf16.msra.mxu1 %v485_v12 }
  0x3b   :  { %437 = vmatprep.subr.bf16.mxu1 %v554_v2 }
  0x3c   :  { %456 = vmatpush3.bf16.msra.mxu0 %v492_v24 }
  0x3d   :  { %457 = vmatprep.subr.bf16.mxu0 %v554_v2 }
  0x3e   :  { %438 = vmatpush3.bf16.msra.mxu1 %v486_v13 }
  0x3f   :  { %439 = vmatprep.subr.bf16.mxu1 %v554_v2 }
  0x40   :  { %458 = vmatpush3.bf16.msra.mxu0 %v493_v25 }
  0x41   :  { %459 = vmatprep.subr.bf16.mxu0 %v554_v2 }
  0x42   :  { %440 = vmatpush3.bf16.msra.mxu1 %v487_v17 }
  0x43   :  { %441 = vmatprep.subr.bf16.mxu1 %v554_v2 }
  0x44   :  { %460 = vmatpush3.bf16.msra.mxu0 %v494_v37 }
  0x45   :  { %461 = vmatprep.subr.bf16.mxu0 %v554_v2 }
  0x46   :  { %442 = vmatpush3.bf16.msra.mxu1 %v192_v19 }
  0x48   :  { %462 = vmatpush3.bf16.msra.mxu0 %v495_v38 }
  0xa8   :  { %v67_v27 = vpop.permute.xlu0 %66  ;;  %v76_v29 = vpop.permute.xlu1 %75 }
  0xa9   :  { %vm77_vm4 = vcmp.eq.s32.totalorder %v64_v28, %v76_v29  ;;  %vm68_vm5 = vcmp.eq.s32.totalorder %v64_v28, %v67_v27 }
  0xad   :  { %v71_v30 = vpop.permute.xlu0 %70 }
  0xae   :  { %vm72_vm6 = vcmp.eq.s32.totalorder %v64_v28, %v71_v30 }
  0xaf   :  { %vm73_vm7 = vmor %vm68_vm5, %vm72_vm6 }
  0xb0   :  { %vm78_vm8 = vmor %vm73_vm7, %vm77_vm4 }
  0xb1   :  { %v79_v31 = vsel %vm78_vm8, 1.0, %v554_v2 }
  0xb2   :  { %v80_v32 = vpack.c.bf16 %v79_v31, %v79_v31 }
  0xb4   :  { %444 = vmatmul.mubr.msk.bf16.vlgmr.msra.gmra.mrb[4].mxu1 %vm184_vm9, %v80_v32 }
 0x100   :  { %v139_v33 = vpop.f32.mrb[0].mxu1 }
 0x101   :  { %v427_v34 = vpop.f32.mrb[1].mxu1 }
 0x102   :  { %v142_v35 = vpop.f32.mrb[2].mxu1 }
 0x103   :  { %v428_v36 = vpop.f32.mrb[3].mxu1 }
 0x187   :  { %v228_v39 = vpop.f32.mrb[4].mxu1 }
 0x188   :  { %v229_v41 = vadd.f32 %v228_v39, %v139_v33  ;;  %v445_v42 = vpop.f32.mrb[5].mxu1 }
 0x189   :  { %v231_v43 = vpop.f32.mrb[6].mxu1 }
 0x18a   :  { %v241_v44 = vadd.f32 %v392_v40, %v229_v41  ;;  %v446_v45 = vpop.f32.mrb[7].mxu1 }
 0x18c   :  { %v242_v46 = vmax.f32 %v241_v44, 0.0 }
 0x18e   :  { %v243_v47 = vpack.c.bf16 %v242_v46, %v242_v46 }
 0x190   :  { %464 = vmatmul.mubr.bf16.vlgmr.msra.gmra.mrb[0].mxu0 %v243_v47 }
 0x263   :  { %v349_v49 = vpop.f32.mrb[0].mxu0 }
 0x264   :  { %v350_v50 = vadd.f32 %v393_v48, %v349_v49  ;;  %v465_v51 = vpop.f32.mrb[1].mxu0 }
 0x265   :  { %v352_v52 = vpop.f32.mrb[2].mxu0 }
 0x266   :  { %v355_v54 = vmax.f32 %v350_v50, 0.0  ;;  %v466_v55 = vpop.f32.mrb[3].mxu0 }
 0x268   :  { %v363_v56 = vmul.f32 %v402_v53, %v355_v54 }
 0x26a   :  { %364 = vadd.xlane.f32.xlu1 %v363_v56 }
 0x2f7   :  { %v365_v58 = vpop.xlane.xlu1 %364 }
 0x2f8   :  { %v368_v59 = vadd.f32 %v367_v57, %v365_v58 }
 0x2fa   :  { %v403_v60 = vmul.f32 -1.442695, %v368_v59 }
 0x2fc   :  { %496 = vpow2.f32 %v403_v60 }
 0x306   :  { %v497_v61 = vpop.eup %496 }
 0x307   :  { %v372_v62 = vadd.f32 1.0, %v497_v61 }
 0x309   :  { %498 = vrcp.f32 %v372_v62 }
 0x313   :  { %v499_v63 = vpop.eup %498 }
 0x314   :  { %376 = vst.msk [vmem:[%s690_s9] sm:$0xff] %vm375_vm10, %v499_v63 }
 0x315   :  { %381 = vsyncpa [#allocation4], 1 }
 0x316   :  { %382 = vsyncpa [#allocation6], 1 }

</bundles_post_ra>
